<compile_context>
chip_gen: v6e
topology: v6e:2x2x1
jax: 0.10.0
libtpu: 0.0.40
codegen_flags: <defaults>
</compile_context>

<pallas_src>
import functools
import math

import jax
import jax.numpy as jnp
from jax.experimental import pallas as pl
from jax.experimental.pallas import tpu as pltpu

_LANE = 128


def _round_up(n, m):
    return ((n + m - 1) // m) * m


def _cdiv(a, b):
    return -(-a // b)


def dsfphi_kernel(x_ref, w1_ref, b1_ref, w2_ref, b2_ref, o_ref, *, mxu_dtype):
    x = x_ref[...]
    w1 = w1_ref[...]
    w2 = w2_ref[...]
    if mxu_dtype is not None:  # bf16 MXU operands; f32 accumulation retained
        x, w1, w2 = x.astype(mxu_dtype), w1.astype(mxu_dtype), w2.astype(mxu_dtype)
    # fc1 + ReLU (MXU matmul with f32 accumulate; f32 bias add + ReLU on the VPU).
    h = jnp.dot(x, w1, preferred_element_type=jnp.float32)
    h = jnp.maximum(h + b1_ref[...], 0.0)
    if mxu_dtype is not None:
        h = h.astype(mxu_dtype)
    # fc2
    y = jnp.dot(h, w2, preferred_element_type=jnp.float32)
    o_ref[...] = (y + b2_ref[...]).astype(o_ref.dtype)


def make_dsfphi(w1, b1, w2, b2, *, pack=None, max_pack=32, compute_dtype=None,
                out_dtype=None, mxu_bf16=True, max_tile_rows=4096,
                vmem_limit_bytes=32 * 1024 * 1024):
    """Build a fused DSFphi forward: y = relu(x @ w1 + b1) @ w2 + b2.

    w1: [in, 16]  b1: [1, 16]  w2: [16, out]  b2: [1, out]  (nn.Linear weights, transposed).
    Packed (kron block-diagonal) weights are built ONCE here; the returned closure only
    pads/reshapes x and launches the kernel.
    """
    in_size, hidden = w1.shape
    out_size = w2.shape[1]

    store_dt = jnp.dtype(compute_dtype) if compute_dtype is not None else jnp.dtype(jnp.float32)
    out_dt = jnp.dtype(out_dtype) if out_dtype is not None else store_dt
    mxu_dtype = jnp.bfloat16 if mxu_bf16 else None

    # Pack factor: smallest P making P*in, P*hidden, P*out all multiples of 128 lanes
    # (lane-dense loads/stores), capped so the kron-expanded weights stay tiny.
    if pack is None:
        need = max(_LANE // math.gcd(_LANE, d) for d in (in_size, hidden, out_size))
        pack = min(need, max_pack)
    P = int(pack)
    kp_in, kp_hid, kp_out = P * in_size, P * hidden, P * out_size

    # Block-diagonal weight expansion (once, wrapper-side). Biases stay f32 (added to a
    # f32 accumulator inside the kernel, so keeping them f32 is free and more accurate).
    w1p = jnp.kron(jnp.eye(P, dtype=jnp.float32), w1.astype(jnp.float32)).astype(store_dt)
    w2p = jnp.kron(jnp.eye(P, dtype=jnp.float32), w2.astype(jnp.float32)).astype(store_dt)
    b1p = jnp.tile(b1.reshape(1, hidden).astype(jnp.float32), (1, P))
    b2p = jnp.tile(b2.reshape(1, out_size).astype(jnp.float32), (1, P))

    kernel = functools.partial(dsfphi_kernel, mxu_dtype=mxu_dtype)

    sub = max(8, 32 // store_dt.itemsize)  # sublane pack: 8 for f32, 16 for bf16
    wbytes = int((w1p.size + w2p.size) * store_dt.itemsize + (b1p.size + b2p.size) * 4)
    row_bytes = 2 * (kp_in * store_dt.itemsize + kp_out * out_dt.itemsize)  # double-buffered

    def forward(x):
        B = x.shape[0]
        x = x.astype(store_dt)
        R = _cdiv(B, P)                                # packed rows
        if R * P != B:                                 # pad <= P-1 rows only (no TM padding)
            x = jnp.pad(x, ((0, R * P - B), (0, 0)))
        xp = x.reshape(R, kp_in)                       # free, row-major

        # Tile size: as large as the VMEM budget allows, capped by max_tile_rows / R.
        budget = vmem_limit_bytes - 4 * 1024 * 1024    # headroom for Mosaic scratch
        tm_cap = max(sub, ((budget - 2 * wbytes) // row_bytes) // sub * sub)
        TM = _round_up(min(max_tile_rows, tm_cap, R), sub)
        nsteps = _cdiv(R, TM)
        # Prefer an even step count (>= 2) so v7x's two TensorCores split the grid evenly.
        if nsteps % 2 == 1 and R > sub:
            tm2 = _round_up(_cdiv(R, nsteps + 1), sub)
            if _cdiv(R, tm2) % 2 == 0:
                TM, nsteps = tm2, _cdiv(R, tm2)

        cost = pl.CostEstimate(
            flops=2 * R * (kp_in * kp_hid + kp_hid * kp_out),
            transcendentals=0,
            bytes_accessed=(int(xp.size) * store_dt.itemsize + wbytes
                            + R * kp_out * out_dt.itemsize),
        )

        yp = pl.pallas_call(
            kernel,
            out_shape=jax.ShapeDtypeStruct((R, kp_out), out_dt),
            grid=(nsteps,),
            in_specs=[
                pl.BlockSpec((TM, kp_in), lambda i: (i, 0)),       # streamed batch tiles
                pl.BlockSpec((kp_in, kp_hid), lambda i: (0, 0)),   # resident weights
                pl.BlockSpec((1, kp_hid), lambda i: (0, 0)),
                pl.BlockSpec((kp_hid, kp_out), lambda i: (0, 0)),
                pl.BlockSpec((1, kp_out), lambda i: (0, 0)),
            ],
            out_specs=pl.BlockSpec((TM, kp_out), lambda i: (i, 0)),
            compiler_params=pltpu.CompilerParams(
                dimension_semantics=("parallel",),   # megacore / 2-TC sharding on v7x
                vmem_limit_bytes=vmem_limit_bytes,
            ),
            cost_estimate=cost,
        )(xp, w1p, b1p, w2p, b2p)

        return yp.reshape(R * P, out_size)[:B]

    return forward


def init_params(key, input_size, output_size):
    """Deterministic init matching nn.Linear shapes; weights stored transposed ([in,out])."""
    k1, k2, k3, k4 = jax.random.split(key, 4)
    w1_t = jax.random.normal(k1, (input_size, 16), jnp.float32) * 0.1
    b1 = jax.random.normal(k2, (1, 16), jnp.float32) * 0.1
    w2_t = jax.random.normal(k3, (16, output_size), jnp.float32) * 0.1
    b2 = jax.random.normal(k4, (1, output_size), jnp.float32) * 0.1
    return w1_t, b1, w2_t, b2


if __name__ == "__main__":
    key = jax.random.PRNGKey(0)
    kx, kparam, kx2 = jax.random.split(key, 3)

    batch, input_size, output_size = 8, 32, 8
    x = jax.random.normal(kx, (batch, input_size), jnp.float32)
    w1, b1, w2, b2 = init_params(kparam, input_size, output_size)

    def ref_fn(x_):
        return jnp.maximum(x_ @ w1 + b1, 0.0) @ w2 + b2

    # Exact-precision path (f32 storage + f32 MXU) -- same math as the PyTorch module.
    fwd_exact = make_dsfphi(w1, b1, w2, b2, mxu_bf16=False)
    out = fwd_exact(x)
    jax.block_until_ready(out)
    assert out.shape == (batch, output_size)
    assert jnp.allclose(out, ref_fn(x), atol=1e-4, rtol=1e-4)

    # Default fast path: f32 storage, bf16 MXU operands (f32 accumulate).
    # B=200 is not a multiple of pack=16 nor of TM -> exercises the ragged multi-step grid.
    fwd = make_dsfphi(w1, b1, w2, b2, max_tile_rows=8)
    x2 = jax.random.normal(kx2, (200, input_size), jnp.float32)
    out2 = fwd(x2)
    jax.block_until_ready(out2)
    assert out2.shape == (200, output_size)
    assert jnp.allclose(out2, ref_fn(x2), atol=2e-2, rtol=2e-2)

    # bf16 storage + bf16 output (halves the x and out HBM streams; f32 accumulation).
    fwd_bf16 = make_dsfphi(w1, b1, w2, b2, compute_dtype=jnp.bfloat16)
    out3 = fwd_bf16(x2)
    jax.block_until_ready(out3)
    assert out3.shape == (200, output_size)
    assert out3.dtype == jnp.bfloat16
    assert jnp.allclose(out3.astype(jnp.float32), ref_fn(x2), atol=5e-2, rtol=5e-2)

    print("KERNEL_OK")
</pallas_src>

<mosaic_0001>
module attributes {stable_mosaic.version = 11 : i64} {
  func.func @dsfphi_kernel(%arg0: i32, %arg1: memref<8x512xf32, #tpu.memory_space<vmem>>, %arg2: memref<512x256xf32, #tpu.memory_space<vmem>>, %arg3: memref<1x256xf32, #tpu.memory_space<vmem>>, %arg4: memref<256x128xf32, #tpu.memory_space<vmem>>, %arg5: memref<1x128xf32, #tpu.memory_space<vmem>>, %arg6: memref<8x128xf32, #tpu.memory_space<vmem>>) attributes {dimension_semantics = [#tpu.dimension_semantics<parallel>], iteration_bounds = array<i64: 1>, scalar_prefetch = 0 : i64, scratch_operands = 0 : i64, tpu.core_type = #tpu.core_type<tc>, window_params = [{transform_indices = @transform_0, window_bounds = array<i64: 8, 512>}, {pipeline_mode = #tpu.pipeline_mode<synchronous>, transform_indices = @transform_1, window_bounds = array<i64: 512, 256>}, {pipeline_mode = #tpu.pipeline_mode<synchronous>, transform_indices = @transform_2, window_bounds = array<i64: 1, 256>}, {pipeline_mode = #tpu.pipeline_mode<synchronous>, transform_indices = @transform_3, window_bounds = array<i64: 256, 128>}, {pipeline_mode = #tpu.pipeline_mode<synchronous>, transform_indices = @transform_4, window_bounds = array<i64: 1, 128>}, {transform_indices = @transform_5, window_bounds = array<i64: 8, 128>}]} {
    %c0 = arith.constant 0 : index
    %c0_0 = arith.constant 0 : index
    %0 = vector.load %arg1[%c0, %c0_0] : memref<8x512xf32, #tpu.memory_space<vmem>>, vector<8x512xf32>
    %c0_1 = arith.constant 0 : index
    %c0_2 = arith.constant 0 : index
    %1 = vector.load %arg2[%c0_1, %c0_2] : memref<512x256xf32, #tpu.memory_space<vmem>>, vector<512x256xf32>
    %c0_3 = arith.constant 0 : index
    %c0_4 = arith.constant 0 : index
    %2 = vector.load %arg4[%c0_3, %c0_4] : memref<256x128xf32, #tpu.memory_space<vmem>>, vector<256x128xf32>
    %cst = arith.constant dense<0.000000e+00> : vector<8x256xf32>
    %3 = tpu.matmul %0, %1, %cst {dimension_numbers = #tpu.dot_dimension_numbers<[1], [0], [0], [1], [0, 0, 1, 1], [], []>} : vector<8x512xf32>, vector<512x256xf32>, vector<8x256xf32> -> vector<8x256xf32>
    %c0_5 = arith.constant 0 : index
    %c0_6 = arith.constant 0 : index
    %4 = vector.load %arg3[%c0_5, %c0_6] : memref<1x256xf32, #tpu.memory_space<vmem>>, vector<1x256xf32>
    %5 = vector.broadcast %4 : vector<1x256xf32> to vector<8x256xf32>
    %6 = arith.addf %3, %5 : vector<8x256xf32>
    %cst_7 = arith.constant 0.000000e+00 : f32
    %7 = vector.broadcast %cst_7 : f32 to vector<8x256xf32>
    %8 = arith.maximumf %6, %7 : vector<8x256xf32>
    %cst_8 = arith.constant dense<0.000000e+00> : vector<8x128xf32>
    %9 = tpu.matmul %8, %2, %cst_8 {dimension_numbers = #tpu.dot_dimension_numbers<[1], [0], [0], [1], [0, 0, 1, 1], [], []>} : vector<8x256xf32>, vector<256x128xf32>, vector<8x128xf32> -> vector<8x128xf32>
    %c0_9 = arith.constant 0 : index
    %c0_10 = arith.constant 0 : index
    %10 = vector.load %arg5[%c0_9, %c0_10] : memref<1x128xf32, #tpu.memory_space<vmem>>, vector<1x128xf32>
    %11 = vector.broadcast %10 : vector<1x128xf32> to vector<8x128xf32>
    %12 = arith.addf %9, %11 : vector<8x128xf32>
    %c0_11 = arith.constant 0 : index
    %c0_12 = arith.constant 0 : index
    %13 = vector.load %arg6[%c0_11, %c0_12] : memref<8x128xf32, #tpu.memory_space<vmem>>, vector<8x128xf32>
    tpu.vector_store %arg6[%c0_11, %c0_12], %12 {strides = array<i32>} : memref<8x128xf32, #tpu.memory_space<vmem>>, vector<8x128xf32>,
    return
  }
  func.func @transform_0(%arg0: i32) -> (i32, i32) {
    %c0_i32 = arith.constant 0 : i32
    %c0_i32_0 = arith.constant 0 : i32
    return %arg0, %c0_i32 : i32, i32
  }
  func.func @transform_1(%arg0: i32) -> (i32, i32) {
    %c0_i32 = arith.constant 0 : i32
    %c0_i32_0 = arith.constant 0 : i32
    %c0_i32_1 = arith.constant 0 : i32
    return %c0_i32, %c0_i32_0 : i32, i32
  }
  func.func @transform_2(%arg0: i32) -> (i32, i32) {
    %c0_i32 = arith.constant 0 : i32
    %c0_i32_0 = arith.constant 0 : i32
    %c0_i32_1 = arith.constant 0 : i32
    return %c0_i32, %c0_i32_0 : i32, i32
  }
  func.func @transform_3(%arg0: i32) -> (i32, i32) {
    %c0_i32 = arith.constant 0 : i32
    %c0_i32_0 = arith.constant 0 : i32
    %c0_i32_1 = arith.constant 0 : i32
    return %c0_i32, %c0_i32_0 : i32, i32
  }
  func.func @transform_4(%arg0: i32) -> (i32, i32) {
    %c0_i32 = arith.constant 0 : i32
    %c0_i32_0 = arith.constant 0 : i32
    %c0_i32_1 = arith.constant 0 : i32
    return %c0_i32, %c0_i32_0 : i32, i32
  }
  func.func @transform_5(%arg0: i32) -> (i32, i32) {
    %c0_i32 = arith.constant 0 : i32
    %c0_i32_0 = arith.constant 0 : i32
    return %arg0, %c0_i32 : i32, i32
  }
}

</mosaic_0001>

<bundles_post_ra>
// kernel: tpu_custom_call.1
= control target key start
LH: loop header
LB: loop body
LE: loop exit
PB: predicated region body
PF: predicated region fallthrough
CT: control target
= control target key end

     0   :  { %10 = vsyncpa [#allocation3], 0  ;;  %s782_s0 = inlined_call_operand.hbm [shape: f32[1,512], index: 0, kind: input, shape index: {}]   ;;  %s783_s1 = inlined_call_operand.hbm [shape: f32[512,256], index: 1, kind: input, shape index: {}]   ;;  %s784_s2 = inlined_call_operand.vmem [shape: f32[1,256], index: 2, kind: input, shape index: {}]   ;;  %s785_s3 = inlined_call_operand.hbm [shape: f32[256,128], index: 3, kind: input, shape index: {}]   ;;  %s786_s4 = inlined_call_operand.vmem [shape: f32[1,128], index: 4, kind: input, shape index: {}]   ;;  %s787_s5 = inlined_call_operand.hbm [shape: f32[1,128], index: 5, kind: output, shape index: {}]  }
   0x1   :  { %11 = vsyncpa [#allocation6], 0 }
   0x2   :  { %12 = vsyncpa [#allocation4], 0 }
   0x3   :  { %17 = vsyncadd [#allocation3], 448  ;;  %s704_s18 = smov [#allocation5]  }
   0x4   :  { %s30_s19 = sshll.u32 %s704_s18, 4  ;;  %s31_s19 = int_to_ptr.vmem [resolvable:$true] %s30_s19 }
   0x5   :  { %s626_s20 = scalar_lea.vmem %s31_s19, 16384  ;;  %p631_p1 = scmp.lt.s32.totalorder %s31_s19, %s31_s19 }
   0x6   :  { %p627_p0 = scmp.ne.s32.totalorder %s31_s19, %s626_s20  ;;  %p632_p2 = scmp.lt.s32.totalorder %s626_s20, %s626_s20 }
   0x8   :  { %p633_p3 = por %p632_p2, %p631_p1 }
   0xa   :  { %p634_p4 = pnand %p633_p3, %p627_p0 }
   0xc   :  { %637 = shalt.err (!%p634_p4)
}
   0xd   :  { %s705_s21 = smov 256   ;;  %s706_s22 = smov 16  }
   0xe   :  { %36 = dma.hbm_to_vmem [thread:$0]  %s783_s1, 16384, %s31_s19, [#allocation6], %s705_s21, %s705_s21, %s706_s22  }
   0xf   :  { %s707_s25 = smov [#allocation2]  }
  0x10   :  { %s18_s26 = sshll.u32 %s707_s25, 4  ;;  %s19_s26 = int_to_ptr.vmem [resolvable:$true] %s18_s26 }
  0x11   :  { %s646_s27 = scalar_lea.vmem %s19_s26, 64  ;;  %s650_s28 = scalar_lea.vmem %s19_s26, 512 }
  0x12   :  { %p647_p5 = scmp.ne.s32.totalorder %s19_s26, %s646_s27  ;;  %p651_p6 = scmp.lt.s32.totalorder %s19_s26, %s19_s26 }
  0x13   :  { %p652_p7 = scmp.lt.s32.totalorder %s650_s28, %s646_s27 }
  0x15   :  { %p653_p8 = por %p652_p7, %p651_p6 }
  0x17   :  { %p654_p9 = pnand %p653_p8, %p647_p5 }
  0x19   :  { %657 = shalt.err (!%p654_p9)
}
  0x1a   :  { %s708_s29 = smov 64   ;;  %s709_s30 = smov 4  }
  0x1b   :  { %24 = dma.hbm_to_vmem [thread:$0]  %s782_s0, 64, %s19_s26, [#allocation3], %s708_s29, %s708_s29, %s709_s30  }
  0x1c   :  { %s710_s8 = smov [#allocation7]  }
  0x1d   :  { %s44_s9 = sshll.u32 %s710_s8, 4  ;;  %s45_s9 = int_to_ptr.vmem [resolvable:$true] %s44_s9 }
  0x1e   :  { %s666_s1 = scalar_lea.vmem %s45_s9, 4096  ;;  %p671_p11 = scmp.lt.s32.totalorder %s45_s9, %s45_s9 }
  0x1f   :  { %p667_p10 = scmp.ne.s32.totalorder %s45_s9, %s666_s1  ;;  %p672_p12 = scmp.lt.s32.totalorder %s666_s1, %s666_s1 }
  0x21   :  { %p673_p13 = por %p672_p12, %p671_p11 }
  0x23   :  { %p674_p0 = pnand %p673_p13, %p667_p10 }
  0x25   :  { %677 = shalt.err (!%p674_p0)
}
  0x26   :  { %s711_s10 = smov 128   ;;  %s712_s11 = smov 8  }
  0x27   :  { %50 = dma.hbm_to_vmem [thread:$0]  %s785_s3, 4096, %s45_s9, [#allocation6], %s711_s10, %s711_s10, %s712_s11  }
  0x28   :  { %698 = dma.done.wait [#allocation3], 512  }
  0x29   :  { %699 = vsyncadd [#allocation3], 4294966784 }
  0x2a   :  { %700 = dma.done.wait [#allocation6], 20480  }
  0x2b   :  { %701 = vsyncadd [#allocation6], 4294946816  ;;  %v101_v0 = vld [vmem:[#allocation5 + $0xf8] sm:$0xff]  ;;  %v100_v2 = vld [vmem:[#allocation5 + $0xf0] sm:$0xff] }
  0x2c   :  { %v165_v1 = vld [vmem:[#allocation5 + $0x2f8] sm:$0xff]  ;;  %322 = vmatprep.subr.mxu0 %v101_v0  ;;  %v164_v3 = vld [vmem:[#allocation5 + $0x2f0] sm:$0xff]  ;;  %v99_v4 = vld [vmem:[#allocation5 + $0xe8] sm:$0xff] }
  0x2d   :  { %393 = vmatprep.subr.mxu1 %v165_v1  ;;  %v163_v5 = vld [vmem:[#allocation5 + $0x2e8] sm:$0xff]  ;;  %323 = vmatpush1.msra.mxu0 %v100_v2  ;;  %v98_v6 = vld [vmem:[#allocation5 + $0xe0] sm:$0xff]  ;;  %v97_v8 = vld [vmem:[#allocation5 + $0xd8] sm:$0xff] }
  0x2e   :  { %394 = vmatpush1.msra.mxu1 %v164_v3  ;;  %v162_v7 = vld [vmem:[#allocation5 + $0x2e0] sm:$0xff]  ;;  %324 = vmatprep.subr.mxu0 %v99_v4  ;;  %v161_v9 = vld [vmem:[#allocation5 + $0x2d8] sm:$0xff]  ;;  %v96_v10 = vld [vmem:[#allocation5 + $0xd0] sm:$0xff] }
  0x2f   :  { %395 = vmatprep.subr.mxu1 %v163_v5  ;;  %v160_v11 = vld [vmem:[#allocation5 + $0x2d0] sm:$0xff]  ;;  %325 = vmatpush1.msra.mxu0 %v98_v6  ;;  %v95_v12 = vld [vmem:[#allocation5 + $0xc8] sm:$0xff]  ;;  %v94_v14 = vld [vmem:[#allocation5 + $0xc0] sm:$0xff] }
  0x30   :  { %396 = vmatpush1.msra.mxu1 %v162_v7  ;;  %v159_v13 = vld [vmem:[#allocation5 + $0x2c8] sm:$0xff]  ;;  %326 = vmatprep.subr.mxu0 %v97_v8  ;;  %v158_v15 = vld [vmem:[#allocation5 + $0x2c0] sm:$0xff]  ;;  %v93_v16 = vld [vmem:[#allocation5 + $0xb8] sm:$0xff] }
  0x31   :  { %397 = vmatprep.subr.mxu1 %v161_v9  ;;  %327 = vmatpush1.msra.mxu0 %v96_v10  ;;  %v157_v17 = vld [vmem:[#allocation5 + $0x2b8] sm:$0xff]  ;;  %v92_v18 = vld [vmem:[#allocation5 + $0xb0] sm:$0xff]  ;;  %v91_v20 = vld [vmem:[#allocation5 + $0xa8] sm:$0xff] }
  0x32   :  { %398 = vmatpush1.msra.mxu1 %v160_v11  ;;  %328 = vmatprep.subr.mxu0 %v95_v12  ;;  %v156_v19 = vld [vmem:[#allocation5 + $0x2b0] sm:$0xff]  ;;  %v155_v21 = vld [vmem:[#allocation5 + $0x2a8] sm:$0xff]  ;;  %v90_v22 = vld [vmem:[#allocation5 + $0xa0] sm:$0xff]  ;;  %v232_v12 = vlaneseq }
  0x33   :  { %399 = vmatprep.subr.mxu1 %v159_v13  ;;  %329 = vmatpush1.msra.mxu0 %v94_v14  ;;  %v154_v23 = vld [vmem:[#allocation5 + $0x2a0] sm:$0xff]  ;;  %v89_v24 = vld [vmem:[#allocation5 + $0x98] sm:$0xff]  ;;  %v88_v26 = vld [vmem:[#allocation5 + $0x90] sm:$0xff]  ;;  %v713_v13 = vmov 1966171168  }
  0x34   :  { %400 = vmatpush1.msra.mxu1 %v158_v15  ;;  %330 = vmatprep.subr.mxu0 %v93_v16  ;;  %v153_v25 = vld [vmem:[#allocation5 + $0x298] sm:$0xff]  ;;  %v152_v27 = vld [vmem:[#allocation5 + $0x290] sm:$0xff]  ;;  %v87_v28 = vld [vmem:[#allocation5 + $0x88] sm:$0xff]  ;;  %v255_v14 = vunpack.c.l.s4 %v713_v13 }
  0x35   :  { %401 = vmatprep.subr.mxu1 %v157_v17  ;;  %331 = vmatpush1.msra.mxu0 %v92_v18  ;;  %v151_v29 = vld [vmem:[#allocation5 + $0x288] sm:$0xff]  ;;  %v86_v30 = vld [vmem:[#allocation5 + $0x80] sm:$0xff]  ;;  %v85_v32 = vld [vmem:[#allocation5 + $0x78] sm:$0xff] }
  0x36   :  { %402 = vmatpush1.msra.mxu1 %v156_v19  ;;  %332 = vmatprep.subr.mxu0 %v91_v20  ;;  %v150_v31 = vld [vmem:[#allocation5 + $0x280] sm:$0xff]  ;;  %v149_v33 = vld [vmem:[#allocation5 + $0x278] sm:$0xff]  ;;  %v84_v34 = vld [vmem:[#allocation5 + $0x70] sm:$0xff] }
  0x37   :  { %403 = vmatprep.subr.mxu1 %v155_v21  ;;  %333 = vmatpush1.msra.mxu0 %v90_v22  ;;  %v148_v35 = vld [vmem:[#allocation5 + $0x270] sm:$0xff]  ;;  %v83_v36 = vld [vmem:[#allocation5 + $0x68] sm:$0xff]  ;;  %v82_v38 = vld [vmem:[#allocation5 + $0x60] sm:$0xff] }
  0x38   :  { %404 = vmatpush1.msra.mxu1 %v154_v23  ;;  %334 = vmatprep.subr.mxu0 %v89_v24  ;;  %v147_v37 = vld [vmem:[#allocation5 + $0x268] sm:$0xff]  ;;  %v146_v39 = vld [vmem:[#allocation5 + $0x260] sm:$0xff]  ;;  %v81_v40 = vld [vmem:[#allocation5 + $0x58] sm:$0xff] }
  0x39   :  { %405 = vmatprep.subr.mxu1 %v153_v25  ;;  %335 = vmatpush1.msra.mxu0 %v88_v26  ;;  %v145_v41 = vld [vmem:[#allocation5 + $0x258] sm:$0xff]  ;;  %v80_v42 = vld [vmem:[#allocation5 + $0x50] sm:$0xff]  ;;  %v79_v44 = vld [vmem:[#allocation5 + $0x48] sm:$0xff]  ;;  %v756_v25 = vshrl.u32 %v232_v12, 7  ;;  %v256_v26 = vunpack.c.0.s8 %v255_v14 }
  0x3a   :  { %406 = vmatpush1.msra.mxu1 %v152_v27  ;;  %336 = vmatprep.subr.mxu0 %v87_v28  ;;  %v144_v43 = vld [vmem:[#allocation5 + $0x250] sm:$0xff]  ;;  %v143_v45 = vld [vmem:[#allocation5 + $0x248] sm:$0xff]  ;;  %v78_v46 = vld [vmem:[#allocation5 + $0x40] sm:$0xff] }
  0x3b   :  { %407 = vmatprep.subr.mxu1 %v151_v29  ;;  %337 = vmatpush1.msra.mxu0 %v86_v30  ;;  %v142_v47 = vld [vmem:[#allocation5 + $0x240] sm:$0xff]  ;;  %v77_v48 = vld [vmem:[#allocation5 + $0x38] sm:$0xff]  ;;  %v76_v50 = vld [vmem:[#allocation5 + $0x30] sm:$0xff] }
  0x3c   :  { %408 = vmatpush1.msra.mxu1 %v150_v31  ;;  %338 = vmatprep.subr.mxu0 %v85_v32  ;;  %v141_v49 = vld [vmem:[#allocation5 + $0x238] sm:$0xff]  ;;  %v140_v51 = vld [vmem:[#allocation5 + $0x230] sm:$0xff]  ;;  %v75_v52 = vld [vmem:[#allocation5 + $0x28] sm:$0xff] }
  0x3d   :  { %409 = vmatprep.subr.mxu1 %v149_v33  ;;  %339 = vmatpush1.msra.mxu0 %v84_v34  ;;  %v139_v53 = vld [vmem:[#allocation5 + $0x228] sm:$0xff]  ;;  %v74_v54 = vld [vmem:[#allocation5 + $0x20] sm:$0xff]  ;;  %v73_v56 = vld [vmem:[#allocation5 + $0x18] sm:$0xff] }
  0x3e   :  { %410 = vmatpush1.msra.mxu1 %v148_v35  ;;  %340 = vmatprep.subr.mxu0 %v83_v36  ;;  %v138_v55 = vld [vmem:[#allocation5 + $0x220] sm:$0xff]  ;;  %v137_v57 = vld [vmem:[#allocation5 + $0x218] sm:$0xff]  ;;  %v72_v58 = vld [vmem:[#allocation5 + $0x10] sm:$0xff] }
  0x3f   :  { %411 = vmatprep.subr.mxu1 %v147_v37  ;;  %341 = vmatpush1.msra.mxu0 %v82_v38  ;;  %v136_v59 = vld [vmem:[#allocation5 + $0x210] sm:$0xff]  ;;  %v71_v60 = vld [vmem:[#allocation5 + $0x8] sm:$0xff]  ;;  %v70_v62 = vld [vmem:[#allocation5] sm:$0xff]  ;;  %v759_v37 = vsub.s32 %v256_v26, %v756_v25 }
  0x40   :  { %412 = vmatpush1.msra.mxu1 %v146_v39  ;;  %342 = vmatprep.subr.mxu0 %v81_v40  ;;  %v135_v61 = vld [vmem:[#allocation5 + $0x208] sm:$0xff]  ;;  %v134_v63 = vld [vmem:[#allocation5 + $0x200] sm:$0xff]  ;;  %v133_v0 = vld [vmem:[#allocation5 + $0x1f8] sm:$0xff] }
  0x41   :  { %413 = vmatprep.subr.mxu1 %v145_v41  ;;  %343 = vmatpush1.msra.mxu0 %v80_v42  ;;  %v197_v1 = vld [vmem:[#allocation5 + $0x3f8] sm:$0xff]  ;;  %v132_v2 = vld [vmem:[#allocation5 + $0x1f0] sm:$0xff]  ;;  %v131_v4 = vld [vmem:[#allocation5 + $0x1e8] sm:$0xff] }
  0x42   :  { %414 = vmatpush1.msra.mxu1 %v144_v43  ;;  %344 = vmatprep.subr.mxu0 %v79_v44  ;;  %v196_v3 = vld [vmem:[#allocation5 + $0x3f0] sm:$0xff]  ;;  %v195_v5 = vld [vmem:[#allocation5 + $0x3e8] sm:$0xff]  ;;  %v130_v6 = vld [vmem:[#allocation5 + $0x1e0] sm:$0xff] }
  0x43   :  { %415 = vmatprep.subr.mxu1 %v143_v45  ;;  %345 = vmatpush1.msra.mxu0 %v78_v46  ;;  %v194_v7 = vld [vmem:[#allocation5 + $0x3e0] sm:$0xff]  ;;  %v129_v8 = vld [vmem:[#allocation5 + $0x1d8] sm:$0xff]  ;;  %v128_v10 = vld [vmem:[#allocation5 + $0x1d0] sm:$0xff] }
  0x44   :  { %416 = vmatpush1.msra.mxu1 %v142_v47  ;;  %346 = vmatprep.subr.mxu0 %v77_v48  ;;  %v193_v9 = vld [vmem:[#allocation5 + $0x3d8] sm:$0xff]  ;;  %v192_v11 = vld [vmem:[#allocation5 + $0x3d0] sm:$0xff]  ;;  %v127_v15 = vld [vmem:[#allocation5 + $0x1c8] sm:$0xff] }
  0x45   :  { %417 = vmatprep.subr.mxu1 %v141_v49  ;;  %347 = vmatpush1.msra.mxu0 %v76_v50  ;;  %v191_v16 = vld [vmem:[#allocation5 + $0x3c8] sm:$0xff]  ;;  %v126_v17 = vld [vmem:[#allocation5 + $0x1c0] sm:$0xff]  ;;  %v125_v19 = vld [vmem:[#allocation5 + $0x1b8] sm:$0xff] }
  0x46   :  { %418 = vmatpush1.msra.mxu1 %v140_v51  ;;  %348 = vmatprep.subr.mxu0 %v75_v52  ;;  %v190_v18 = vld [vmem:[#allocation5 + $0x3c0] sm:$0xff]  ;;  %v189_v20 = vld [vmem:[#allocation5 + $0x3b8] sm:$0xff]  ;;  %v124_v21 = vld [vmem:[#allocation5 + $0x1b0] sm:$0xff] }
  0x47   :  { %419 = vmatprep.subr.mxu1 %v139_v53  ;;  %349 = vmatpush1.msra.mxu0 %v74_v54  ;;  %v188_v22 = vld [vmem:[#allocation5 + $0x3b0] sm:$0xff]  ;;  %v123_v23 = vld [vmem:[#allocation5 + $0x1a8] sm:$0xff]  ;;  %v122_v27 = vld [vmem:[#allocation5 + $0x1a0] sm:$0xff] }
  0x48   :  { %420 = vmatpush1.msra.mxu1 %v138_v55  ;;  %350 = vmatprep.subr.mxu0 %v73_v56  ;;  %v187_v24 = vld [vmem:[#allocation5 + $0x3a8] sm:$0xff]  ;;  %v186_v28 = vld [vmem:[#allocation5 + $0x3a0] sm:$0xff]  ;;  %v121_v29 = vld [vmem:[#allocation5 + $0x198] sm:$0xff] }
  0x49   :  { %421 = vmatprep.subr.mxu1 %v137_v57  ;;  %351 = vmatpush1.msra.mxu0 %v72_v58  ;;  %v185_v30 = vld [vmem:[#allocation5 + $0x398] sm:$0xff]  ;;  %v120_v31 = vld [vmem:[#allocation5 + $0x190] sm:$0xff]  ;;  %v119_v33 = vld [vmem:[#allocation5 + $0x188] sm:$0xff] }
  0x4a   :  { %422 = vmatpush1.msra.mxu1 %v136_v59  ;;  %352 = vmatprep.subr.mxu0 %v71_v60  ;;  %v184_v32 = vld [vmem:[#allocation5 + $0x390] sm:$0xff]  ;;  %v183_v34 = vld [vmem:[#allocation5 + $0x388] sm:$0xff]  ;;  %v118_v35 = vld [vmem:[#allocation5 + $0x180] sm:$0xff] }
  0x4b   :  { %423 = vmatprep.subr.mxu1 %v135_v61  ;;  %353 = vmatpush1.msra.mxu0 %v70_v62  ;;  %v182_v36 = vld [vmem:[#allocation5 + $0x380] sm:$0xff]  ;;  %v615_v39 = vld.sshfl [vmem:[#allocation2 + $0x8] sm:$0xff pattern:$0x75316420]  ;;  %v117_v41 = vld [vmem:[#allocation5 + $0x178] sm:$0xff] }
  0x4c   :  { %424 = vmatpush1.msra.mxu1 %v134_v63  ;;  %354 = vmatprep.subr.mxu0 %v133_v0  ;;  %v761_v38 = vld.sshfl [vmem:[#allocation2] sm:$0xff pattern:$0x75316420]  ;;  %v616_v40 = vld.sshfl [vmem:[#allocation2 + $0x10] sm:$0xff pattern:$0x75316420] }
  0x4d   :  { %425 = vmatprep.subr.mxu1 %v197_v1  ;;  %355 = vmatpush2.msra.mxu0 %v132_v2  ;;  %v181_v42 = vld [vmem:[#allocation5 + $0x378] sm:$0xff]  ;;  %v116_v44 = vld [vmem:[#allocation5 + $0x170] sm:$0xff]  ;;  %v115_v46 = vld [vmem:[#allocation5 + $0x168] sm:$0xff]  ;;  %v283_v56 = vcombine.high %v761_v38, %v615_v39  ;;  %v282_v62 = vcombine.low %v761_v38, %v615_v39 }
  0x4e   :  { %426 = vmatpush2.msra.mxu1 %v196_v3  ;;  %356 = vmatprep.subr.mxu0 %v131_v4  ;;  %v617_v43 = vld.sshfl [vmem:[#allocation2 + $0x18] sm:$0xff pattern:$0x75316420]  ;;  %v180_v45 = vld [vmem:[#allocation5 + $0x370] sm:$0xff]  ;;  %v179_v47 = vld [vmem:[#allocation5 + $0x368] sm:$0xff] }
  0x4f   :  { %427 = vmatprep.subr.mxu1 %v195_v5  ;;  %357 = vmatpush2.msra.mxu0 %v130_v6  ;;  %v114_v48 = vld [vmem:[#allocation5 + $0x160] sm:$0xff]  ;;  %v113_v50 = vld [vmem:[#allocation5 + $0x158] sm:$0xff]  ;;  %v112_v52 = vld [vmem:[#allocation5 + $0x150] sm:$0xff]  ;;  %v285_v57 = vcombine.high %v616_v40, %v617_v43  ;;  %v284_v63 = vcombine.low %v616_v40, %v617_v43  ;;  %v299_v4 = vrot.slane %v283_v56, %v759_v37 }
  0x50   :  { %428 = vmatpush2.msra.mxu1 %v194_v7  ;;  %358 = vmatprep.subr.mxu0 %v129_v8  ;;  %v178_v49 = vld [vmem:[#allocation5 + $0x360] sm:$0xff]  ;;  %v177_v51 = vld [vmem:[#allocation5 + $0x358] sm:$0xff]  ;;  %v176_v53 = vld [vmem:[#allocation5 + $0x350] sm:$0xff] }
  0x51   :  { %429 = vmatprep.subr.mxu1 %v193_v9  ;;  %359 = vmatpush2.msra.mxu0 %v128_v10  ;;  %v111_v54 = vld [vmem:[#allocation5 + $0x148] sm:$0xff]  ;;  %v110_v58 = vld [vmem:[#allocation5 + $0x140] sm:$0xff]  ;;  %v109_v60 = vld [vmem:[#allocation5 + $0x138] sm:$0xff]  ;;  %v313_v5 = vrot.slane %v285_v57, %v759_v37  ;;  %v292_v10 = vrot.slane %v282_v62, %v759_v37  ;;  %v238_v57 = vsub.s32 1, %v756_v25 }
  0x52   :  { %430 = vmatpush2.msra.mxu1 %v192_v11  ;;  %360 = vmatprep.subr.mxu0 %v127_v15  ;;  %v175_v55 = vld [vmem:[#allocation5 + $0x348] sm:$0xff]  ;;  %v174_v59 = vld [vmem:[#allocation5 + $0x340] sm:$0xff]  ;;  %v173_v61 = vld [vmem:[#allocation5 + $0x338] sm:$0xff]  ;;  %v306_v11 = vrot.slane %v284_v63, %v759_v37 }
  0x53   :  { %431 = vmatprep.subr.mxu1 %v191_v16  ;;  %361 = vmatpush2.msra.mxu0 %v126_v17  ;;  %v108_v0 = vld [vmem:[#allocation5 + $0x130] sm:$0xff]  ;;  %v107_v2 = vld [vmem:[#allocation5 + $0x128] sm:$0xff]  ;;  %v106_v6 = vld [vmem:[#allocation5 + $0x120] sm:$0xff]  ;;  %v316_v16 = vcombine.low %v299_v4, %v313_v5 }
  0x54   :  { %432 = vmatpush2.msra.mxu1 %v190_v18  ;;  %362 = vmatprep.subr.mxu0 %v125_v19  ;;  %v172_v1 = vld [vmem:[#allocation5 + $0x330] sm:$0xff]  ;;  %v171_v3 = vld [vmem:[#allocation5 + $0x328] sm:$0xff]  ;;  %v170_v7 = vld [vmem:[#allocation5 + $0x320] sm:$0xff]  ;;  %v317_v18 = vcombine.high %v299_v4, %v313_v5 }
  0x55   :  { %433 = vmatprep.subr.mxu1 %v189_v20  ;;  %363 = vmatpush2.msra.mxu0 %v124_v21  ;;  %v105_v8 = vld [vmem:[#allocation5 + $0x118] sm:$0xff]  ;;  %v104_v12 = vld [vmem:[#allocation5 + $0x110] sm:$0xff]  ;;  %v103_v14 = vld [vmem:[#allocation5 + $0x108] sm:$0xff]  ;;  %v314_v20 = vcombine.low %v292_v10, %v306_v11  ;;  %v315_v21 = vcombine.high %v292_v10, %v306_v11 }
  0x56   :  { %434 = vmatpush2.msra.mxu1 %v188_v22  ;;  %364 = vmatprep.subr.mxu0 %v123_v23  ;;  %v169_v9 = vld [vmem:[#allocation5 + $0x318] sm:$0xff]  ;;  %v168_v13 = vld [vmem:[#allocation5 + $0x310] sm:$0xff]  ;;  %v167_v15 = vld [vmem:[#allocation5 + $0x308] sm:$0xff] }
  0x57   :  { %435 = vmatprep.subr.mxu1 %v187_v24  ;;  %365 = vmatpush2.msra.mxu0 %v122_v27  ;;  %v102_v17 = vld [vmem:[#allocation5 + $0x100] sm:$0xff]  ;;  %v229_v22 = vld [vmem:[#allocation7 + $0xf8] sm:$0xff]  ;;  %v228_v24 = vld [vmem:[#allocation7 + $0xf0] sm:$0xff] }
  0x58   :  { %436 = vmatpush2.msra.mxu1 %v186_v28  ;;  %366 = vmatprep.subr.mxu0 %v121_v29  ;;  %v166_v19 = vld [vmem:[#allocation5 + $0x300] sm:$0xff]  ;;  %v213_v23 = vld [vmem:[#allocation7 + $0x78] sm:$0xff]  ;;  %v212_v26 = vld [vmem:[#allocation7 + $0x70] sm:$0xff] }
  0x59   :  { %437 = vmatprep.subr.mxu1 %v185_v30  ;;  %367 = vmatpush2.msra.mxu0 %v120_v31  ;;  %v227_v27 = vld [vmem:[#allocation7 + $0xe8] sm:$0xff]  ;;  %v226_v29 = vld [vmem:[#allocation7 + $0xe0] sm:$0xff]  ;;  %v225_v31 = vld [vmem:[#allocation7 + $0xd8] sm:$0xff] }
  0x5a   :  { %438 = vmatpush2.msra.mxu1 %v184_v32  ;;  %368 = vmatprep.subr.mxu0 %v119_v33  ;;  %v211_v28 = vld [vmem:[#allocation7 + $0x68] sm:$0xff]  ;;  %v210_v30 = vld [vmem:[#allocation7 + $0x60] sm:$0xff]  ;;  %v209_v32 = vld [vmem:[#allocation7 + $0x58] sm:$0xff] }
  0x5b   :  { %439 = vmatprep.subr.mxu1 %v183_v34  ;;  %369 = vmatpush2.msra.mxu0 %v118_v35  ;;  %v224_v33 = vld [vmem:[#allocation7 + $0xd0] sm:$0xff]  ;;  %v223_v35 = vld [vmem:[#allocation7 + $0xc8] sm:$0xff]  ;;  %v222_v37 = vld [vmem:[#allocation7 + $0xc0] sm:$0xff] }
  0x5c   :  { %440 = vmatpush2.msra.mxu1 %v182_v36  ;;  %370 = vmatprep.subr.mxu0 %v117_v41  ;;  %v208_v34 = vld [vmem:[#allocation7 + $0x50] sm:$0xff]  ;;  %v207_v36 = vld [vmem:[#allocation7 + $0x48] sm:$0xff]  ;;  %v206_v38 = vld [vmem:[#allocation7 + $0x40] sm:$0xff] }
  0x5d   :  { %441 = vmatprep.subr.mxu1 %v181_v42  ;;  %371 = vmatpush2.msra.mxu0 %v116_v44  ;;  %v221_v39 = vld [vmem:[#allocation7 + $0xb8] sm:$0xff]  ;;  %v220_v41 = vld [vmem:[#allocation7 + $0xb0] sm:$0xff]  ;;  %v219_v43 = vld [vmem:[#allocation7 + $0xa8] sm:$0xff] }
  0x5e   :  { %442 = vmatpush2.msra.mxu1 %v180_v45  ;;  %372 = vmatprep.subr.mxu0 %v115_v46  ;;  %v205_v40 = vld [vmem:[#allocation7 + $0x38] sm:$0xff]  ;;  %v204_v42 = vld [vmem:[#allocation7 + $0x30] sm:$0xff]  ;;  %v203_v44 = vld [vmem:[#allocation7 + $0x28] sm:$0xff] }
  0x5f   :  { %443 = vmatprep.subr.mxu1 %v179_v47  ;;  %373 = vmatpush2.msra.mxu0 %v114_v48  ;;  %v218_v45 = vld [vmem:[#allocation7 + $0xa0] sm:$0xff]  ;;  %v217_v47 = vld [vmem:[#allocation7 + $0x98] sm:$0xff] }
  0x60   :  { %444 = vmatpush2.msra.mxu1 %v178_v49  ;;  %374 = vmatprep.subr.mxu0 %v113_v50  ;;  %v202_v46 = vld [vmem:[#allocation7 + $0x20] sm:$0xff]  ;;  %v201_v48 = vld [vmem:[#allocation7 + $0x18] sm:$0xff]  ;;  %v216_v49 = vld [vmem:[#allocation7 + $0x90] sm:$0xff] }
  0x61   :  { %445 = vmatprep.subr.mxu1 %v177_v51  ;;  %375 = vmatpush2.msra.mxu0 %v112_v52  ;;  %v200_v50 = vld [vmem:[#allocation7 + $0x10] sm:$0xff]  ;;  %v215_v51 = vld [vmem:[#allocation7 + $0x88] sm:$0xff]  ;;  %v230_v56 = vld [vmem:[%s784_s2] sm:$0x3] }
  0x62   :  { %446 = vmatpush2.msra.mxu1 %v176_v53  ;;  %376 = vmatprep.subr.mxu0 %v111_v54  ;;  %v199_v52 = vld [vmem:[#allocation7 + $0x8] sm:$0xff]  ;;  %v214_v53 = vld [vmem:[#allocation7 + $0x80] sm:$0xff] }
  0x63   :  { %447 = vmatprep.subr.mxu1 %v175_v55  ;;  %377 = vmatpush2.msra.mxu0 %v110_v58  ;;  %v198_v54 = vld [vmem:[#allocation7] sm:$0xff]  ;;  %v234_v55 = vsub.s32 0, %v756_v25 }
  0x64   :  { %448 = vmatpush2.msra.mxu1 %v174_v59  ;;  %378 = vmatprep.subr.mxu0 %v109_v60  ;;  %v239_v59 = vrot.slane %v230_v56, %v238_v57 }
  0x65   :  { %449 = vmatprep.subr.mxu1 %v173_v61  ;;  %379 = vmatpush2.msra.mxu0 %v108_v0  ;;  %v235_v58 = vrot.slane %v230_v56, %v234_v55 }
  0x66   :  { %450 = vmatpush2.msra.mxu1 %v172_v1  ;;  %380 = vmatprep.subr.mxu0 %v107_v2 }
  0x67   :  { %451 = vmatprep.subr.mxu1 %v171_v3  ;;  %381 = vmatpush2.msra.mxu0 %v106_v6 }
  0x68   :  { %452 = vmatpush2.msra.mxu1 %v170_v7  ;;  %382 = vmatprep.subr.mxu0 %v105_v8  ;;  %v562_v7 = vld [vmem:[%s786_s4] ss:$0 sm:$0xff] }
  0x69   :  { %453 = vmatprep.subr.mxu1 %v169_v9  ;;  %383 = vmatpush2.msra.mxu0 %v104_v12 }
  0x6a   :  { %454 = vmatpush2.msra.mxu1 %v168_v13  ;;  %384 = vmatprep.subr.mxu0 %v103_v14 }
  0x6b   :  { %455 = vmatprep.subr.mxu1 %v167_v15  ;;  %385 = vmatpush2.msra.mxu0 %v102_v17 }
  0x6c   :  { %386 = vmatprep.mubr.f32.mxu0 %v316_v16  ;;  %456 = vmatpush2.msra.mxu1 %v166_v19 }
  0x6d   :  { %457 = vmatprep.mubr.f32.mxu1 %v317_v18  ;;  %387 = vmatmul.mubr.f32.vlgmr.msra.gmra.mxu0 %v314_v20 }
  0x6e   :  { %458 = vmatmul.mubr.f32.vlgmr.msra.gmra.mxu1 %v315_v21  ;;  %563 = vmatprep.subr.mxu0 %v229_v22 }
  0x6f   :  { %564 = vmatpush3.msra.mxu0 %v213_v23 }
  0x70   :  { %565 = vmatprep.subr.mxu0 %v228_v24 }
  0x71   :  { %566 = vmatpush3.msra.mxu0 %v212_v26 }
  0x72   :  { %567 = vmatprep.subr.mxu0 %v227_v27 }
  0x73   :  { %568 = vmatpush3.msra.mxu0 %v211_v28 }
  0x74   :  { %569 = vmatprep.subr.mxu0 %v226_v29 }
  0x75   :  { %570 = vmatpush3.msra.mxu0 %v210_v30 }
  0x76   :  { %571 = vmatprep.subr.mxu0 %v225_v31 }
  0x77   :  { %572 = vmatpush3.msra.mxu0 %v209_v32 }
  0x78   :  { %573 = vmatprep.subr.mxu0 %v224_v33 }
  0x79   :  { %574 = vmatpush3.msra.mxu0 %v208_v34 }
  0x7a   :  { %575 = vmatprep.subr.mxu0 %v223_v35 }
  0x7b   :  { %576 = vmatpush3.msra.mxu0 %v207_v36 }
  0x7c   :  { %577 = vmatprep.subr.mxu0 %v222_v37 }
  0x7d   :  { %578 = vmatpush3.msra.mxu0 %v206_v38 }
  0x7e   :  { %579 = vmatprep.subr.mxu0 %v221_v39 }
  0x7f   :  { %580 = vmatpush3.msra.mxu0 %v205_v40 }
  0x80   :  { %581 = vmatprep.subr.mxu0 %v220_v41 }
  0x81   :  { %582 = vmatpush3.msra.mxu0 %v204_v42 }
  0x82   :  { %583 = vmatprep.subr.mxu0 %v219_v43 }
  0x83   :  { %584 = vmatpush3.msra.mxu0 %v203_v44 }
  0x84   :  { %585 = vmatprep.subr.mxu0 %v218_v45 }
  0x85   :  { %586 = vmatpush3.msra.mxu0 %v202_v46 }
  0x86   :  { %587 = vmatprep.subr.mxu0 %v217_v47 }
  0x87   :  { %588 = vmatpush3.msra.mxu0 %v201_v48 }
  0x88   :  { %589 = vmatprep.subr.mxu0 %v216_v49 }
  0x89   :  { %590 = vmatpush3.msra.mxu0 %v200_v50 }
  0x8a   :  { %591 = vmatprep.subr.mxu0 %v215_v51 }
  0x8b   :  { %592 = vmatpush3.msra.mxu0 %v199_v52 }
  0x8c   :  { %593 = vmatprep.subr.mxu0 %v214_v53 }
  0x8d   :  { %594 = vmatpush3.msra.mxu0 %v198_v54 }
 0x12d   :  { %v388_v60 = vpop.f32.mrf.mxu0 }
 0x12e   :  { %v459_v61 = vpop.f32.mrf.mxu1  ;;  %v389_v62 = vadd.f32 %v388_v60, %v235_v58 }
 0x12f   :  { %v390_v63 = vpop.f32.mrf.mxu0 }
 0x130   :  { %v391_v0 = vadd.f32 %v390_v63, %v239_v59  ;;  %v460_v1 = vadd.f32 %v459_v61, %v389_v62  ;;  %v461_v2 = vpop.f32.mrf.mxu1 }
 0x132   :  { %v462_v3 = vadd.f32 %v461_v2, %v391_v0  ;;  %v464_v5 = vmax.f32 %v460_v1, 0.0 }
 0x134   :  { %v465_v4 = vmax.f32 %v462_v3, 0.0 }
 0x136   :  { %537 = vmatprep.mubr.f32.mxu0 %v465_v4 }
 0x137   :  { %538 = vmatmul.mubr.f32.vlgmr.msra.gmra.mxu0 %v464_v5 }
 0x1f7   :  { %v595_v6 = vpop.f32.mrf.mxu0 }
 0x1f9   :  { %v596_v25 = vpop.f32.mrf.mxu0 }
 0x1fa   :  { %v597_v8 = vadd.f32 %v596_v25, %v595_v6 }
 0x1fc   :  { %v540_v9 = vadd.f32 %v597_v8, %v562_v7 }
 0x1fe   :  { %543 = vst [vmem:[#allocation8] sm:$0xff] %v540_v9 }
 0x1ff   :  { %548 = vsyncadd [#allocation4], 112  ;;  %s714_s2 = smov [#allocation8]  }
 0x200   :  { %s549_s16 = sshll.u32 %s714_s2, 4  ;;  %s550_s16 = int_to_ptr.vmem [resolvable:$true] %s549_s16 }
 0x201   :  { %s678_s17 = scalar_lea.vmem %s550_s16, 16  ;;  %s682_s18 = scalar_lea.vmem %s550_s16, 128 }
 0x202   :  { %p679_p1 = scmp.ne.s32.totalorder %s550_s16, %s678_s17  ;;  %p683_p2 = scmp.lt.s32.totalorder %s550_s16, %s550_s16 }
 0x203   :  { %p684_p3 = scmp.lt.s32.totalorder %s682_s18, %s678_s17 }
 0x205   :  { %p685_p4 = por %p684_p3, %p683_p2 }
 0x207   :  { %p686_p5 = pnand %p685_p4, %p679_p1 }
 0x209   :  { %689 = shalt.err (!%p686_p5)
}
 0x20a   :  { %s715_s19 = smov 1  }
 0x20b   :  { %555 = dma.vmem_to_hbm [thread:$0]  %s550_s16, 16, %s787_s5, [#allocation4], %s706_s22, %s706_s22, %s715_s19  }
 0x20c   :  { %702 = dma.done.wait [#allocation4], 128  }
 0x20d   :  { %703 = vsyncadd [#allocation4], 4294967168 }
 0x20e   :  { %559 = vsyncpa [#allocation3], 1 }
 0x20f   :  { %560 = vsyncpa [#allocation6], 1 }
 0x210   :  { %561 = vsyncpa [#allocation4], 1 }

</bundles_post_ra>
